<compile_context>
chip_gen: v7x
topology: tpu7x:2x2x1
jax: 0.10.0
libtpu: 0.0.40
codegen_flags: <defaults>
</compile_context>

<pallas_src>
import math
import functools

import jax
import jax.numpy as jnp
from jax import lax
from jax.experimental import pallas as pl
from jax.experimental.pallas import tpu as pltpu


def _pick_t_tile(T):
    """Largest lane-dense tile (multiple of 128, capped at 2048) dividing T."""
    if T % 128 != 0:
        return T                          # full-dim block is always legal
    for cand in (2048, 1024, 512, 256, 128):
        if T % cand == 0:
            return cand
    return T


def _mask_expand_kernel(starts_ref, out_ref, *, mask_length, n_sel, t_tile):
    """Expand per-batch start indices into a dense (B, t_tile) mask tile.

    starts_ref: (B, n_sel) int32 in VMEM — distinct start positions per batch.
    out_ref:    (B, t_tile) int8 in VMEM — 1 where masked, 0 elsewhere.
    """
    B = out_ref.shape[0]
    base = pl.program_id(0) * t_tile                       # global time offset
    t_idx = base + lax.broadcasted_iota(jnp.int32, (B, t_tile), 1)
    starts = starts_ref[...]                               # (B, n_sel)

    s0 = starts[:, 0:1]                                    # (B, 1) -> lanes
    m = (t_idx >= s0) & (t_idx < s0 + mask_length)
    # n_sel = ceil(T*mask_prob/mask_length) is small; unrolled OR-accumulation
    # keeps everything as integer compares + vor on the 4 VALU slots.
    # TODO(synk): for very long sequences (n_sel >> 32) switch to +1/-1
    # scatter at start / start+mask_length followed by cumsum > 0 along T.
    for k in range(1, n_sel):
        s = starts[:, k:k + 1]
        m = m | ((t_idx >= s) & (t_idx < s + mask_length))

    out_ref[...] = m.astype(jnp.int8)


def _select_starts(key, B, valid_starts, n_sel):
    """Vectorized analogue of per-batch torch.randperm(valid_starts)[:n_sel].

    top_k over a (B, valid_starts) block of random scores yields n_sel
    distinct, uniformly chosen start indices per batch row in one shot.
    """
    scores = jax.random.uniform(key, (B, valid_starts))
    _, starts = lax.top_k(scores, n_sel)
    return starts.astype(jnp.int32)


def mask_forward(x, key, mask_prob=0.065, mask_length=10):
    """JAX/Pallas equivalent of Mask.forward. Returns (B, T) bool mask."""
    B, T, C = x.shape
    total_masked_length = int(T * mask_prob)
    num_masks = math.ceil(total_masked_length / mask_length)
    valid_starts = T - mask_length + 1

    if valid_starts <= 0 or num_masks == 0:
        return jnp.zeros((B, T), dtype=jnp.bool_)

    n_sel = min(num_masks, valid_starts)
    starts = _select_starts(key, B, valid_starts, n_sel)   # (B, n_sel) int32

    t_tile = _pick_t_tile(T)
    kern = functools.partial(_mask_expand_kernel,
                             mask_length=mask_length, n_sel=n_sel,
                             t_tile=t_tile)

    out_i8 = pl.pallas_call(
        kern,
        out_shape=jax.ShapeDtypeStruct((B, T), jnp.int8),
        grid=(T // t_tile,),
        in_specs=[pl.BlockSpec((B, n_sel), lambda i: (0, 0))],   # resident
        out_specs=pl.BlockSpec((B, t_tile), lambda i: (0, i)),   # lane-dense
        compiler_params=pltpu.CompilerParams(
            dimension_semantics=("parallel",)),                  # v7x megacore
    )(starts)

    # bool is byte-backed on TPU; this convert is a trivial i8->pred pass that
    # XLA fuses into the consumer.
    # TODO(synk): store jnp.bool_ directly from the kernel (and, better, fuse
    # the mask expansion into the consumer that applies it to the (B, T, C)
    # features) once the deployment target's bool-VMEM-store support is pinned.
    return out_i8.astype(jnp.bool_)


def _reference_mask(starts, T, mask_length):
    """Pure-JAX reference expansion of the same starts (for validation)."""
    t = jnp.arange(T, dtype=jnp.int32)[None, None, :]       # (1, 1, T)
    s = starts[:, :, None]                                  # (B, n_sel, 1)
    return jnp.any((t >= s) & (t < s + mask_length), axis=1)


if __name__ == "__main__":
    key = jax.random.PRNGKey(0)
    mask_prob, mask_length = 0.065, 10

    # Small shape (single start per row) and a longer one exercising
    # multiple T tiles and n_sel > 1 (with possibly overlapping intervals).
    for (B, T, C) in [(2, 128, 16), (2, 2560, 8)]:
        k_case = jax.random.fold_in(key, T)
        k_x, k_mask = jax.random.split(k_case)

        x = jax.random.normal(k_x, (B, T, C), dtype=jnp.float32)
        mask = mask_forward(x, k_mask, mask_prob=mask_prob,
                            mask_length=mask_length)
        mask = jax.block_until_ready(mask)

        assert mask.shape == (B, T)
        assert mask.dtype == jnp.bool_

        # Rebuild the same starts deterministically and compare against a
        # pure-JAX reference expansion (robust to overlapping intervals).
        total_masked_length = int(T * mask_prob)
        num_masks = math.ceil(total_masked_length / mask_length)
        valid_starts = T - mask_length + 1
        n_sel = min(num_masks, valid_starts)
        starts = _select_starts(k_mask, B, valid_starts, n_sel)
        ref = _reference_mask(starts, T, mask_length)
        assert bool(jnp.array_equal(mask, ref)), f"mismatch at T={T}"

        # Each row is masked by at least one full interval, at most n_sel.
        per_row = jnp.sum(mask.astype(jnp.int32), axis=1)
        assert bool(jnp.all(per_row >= mask_length))
        assert bool(jnp.all(per_row <= n_sel * mask_length))

    print("KERNEL_OK")
</pallas_src>

<mosaic_0001>
module attributes {stable_mosaic.version = 11 : i64} {
  func.func @_mask_expand_kernel(%arg0: i32, %arg1: memref<2x1xi32, #tpu.memory_space<vmem>>, %arg2: memref<2x128xi8, #tpu.memory_space<vmem>>) attributes {dimension_semantics = [#tpu.dimension_semantics<parallel>], iteration_bounds = array<i64: 1>, scalar_prefetch = 0 : i64, scratch_operands = 0 : i64, tpu.core_type = #tpu.core_type<tc>, window_params = [{pipeline_mode = #tpu.pipeline_mode<synchronous>, transform_indices = @transform_0, window_bounds = array<i64: 2, 1>}, {transform_indices = @transform_1, window_bounds = array<i64: 2, 128>}]} {
    %c128_i32 = arith.constant 128 : i32
    %0 = arith.muli %arg0, %c128_i32 : i32
    %1 = tpu.iota {dimensions = array<i32: 1>} : vector<2x128xi32>
    %2 = vector.broadcast %0 : i32 to vector<2x128xi32>
    %3 = arith.addi %2, %1 : vector<2x128xi32>
    %c0 = arith.constant 0 : index
    %c0_0 = arith.constant 0 : index
    %4 = vector.load %arg1[%c0, %c0_0] : memref<2x1xi32, #tpu.memory_space<vmem>>, vector<2x1xi32>
    %5 = vector.broadcast %4 : vector<2x1xi32> to vector<2x128xi32>
    %6 = arith.cmpi sge, %3, %5 : vector<2x128xi32>
    %c10_i32 = arith.constant 10 : i32
    %7 = vector.broadcast %c10_i32 : i32 to vector<2x1xi32>
    %8 = arith.addi %4, %7 : vector<2x1xi32>
    %9 = vector.broadcast %8 : vector<2x1xi32> to vector<2x128xi32>
    %10 = arith.cmpi slt, %3, %9 : vector<2x128xi32>
    %11 = arith.andi %6, %10 : vector<2x128xi1>
    %12 = arith.extui %11 : vector<2x128xi1> to vector<2x128xi8>
    %c0_1 = arith.constant 0 : index
    %c0_2 = arith.constant 0 : index
    %13 = vector.load %arg2[%c0_1, %c0_2] : memref<2x128xi8, #tpu.memory_space<vmem>>, vector<2x128xi8>
    tpu.vector_store %arg2[%c0_1, %c0_2], %12 {strides = array<i32>} : memref<2x128xi8, #tpu.memory_space<vmem>>, vector<2x128xi8>,
    return
  }
  func.func @transform_0(%arg0: i32) -> (i32, i32) {
    %c0_i32 = arith.constant 0 : i32
    %c0_i32_0 = arith.constant 0 : i32
    %c0_i32_1 = arith.constant 0 : i32
    return %c0_i32, %c0_i32_0 : i32, i32
  }
  func.func @transform_1(%arg0: i32) -> (i32, i32) {
    %c0_i32 = arith.constant 0 : i32
    %c0_i32_0 = arith.constant 0 : i32
    return %c0_i32, %arg0 : i32, i32
  }
}

</mosaic_0001>

<bundles_post_ra>
// kernel: tpu_custom_call.1
= control target key start
LH: loop header
LB: loop body
LE: loop exit
PB: predicated region body
PF: predicated region fallthrough
CT: control target
= control target key end

     0   :  { %s104_s0 = inlined_call_operand.vmem [shape: s32[2,1], index: 0, kind: input, shape index: {}]   ;;  %s105_s1 = inlined_call_operand.hbm [shape: s8[2,128], index: 1, kind: output, shape index: {}]  }
   0x1   :  { %v16_v0 = vld [vmem:[%s104_s0] sm:$0x3] }
   0x2   :  { %6 = vsyncpa [#allocation3], 0  ;;  %v77_v1 = vmov 0   ;;  %v21_v2 = vadd.s32 10, %v16_v0  ;;  %v12_v3 = vlaneseq  ;;  %vm30_vm0 = vcmask 1040384   ;;  %s78_s8 = smov [#allocation2]  }
   0x3   :  { %52 = vset.pattern.permute.xlu0 %v77_v1  ;;  %vm31_vm1 = vsmask.f32 256  ;;  %s42_s9 = sshll.u32 %s78_s8, 4  ;;  %v33_v7 = vld [vmem:[#allocation2] sm:$0x1]  ;;  %s43_s9 = int_to_ptr.vmem [resolvable:$true] %s42_s9 }
   0x4   :  { %18 = vperm.xlu0 %52, %v16_v0   ;;  %v13_v5 = vand.u32 127, %v12_v3  ;;  %vm32_vm4 = vmand %vm30_vm0, %vm31_vm1  ;;  %s53_s0 = scalar_lea.vmem %s43_s9, 16  ;;  %s57_s10 = scalar_lea.vmem %s43_s9, 32 }
   0x5   :  { %p54_p0 = scmp.ne.s32.totalorder %s43_s9, %s53_s0  ;;  %p58_p1 = scmp.lt.s32.totalorder %s43_s9, %s43_s9 }
   0x6   :  { %p59_p2 = scmp.lt.s32.totalorder %s57_s10, %s53_s0 }
   0x8   :  { %23 = vperm.xlu0 %52, %v21_v2   ;;  %p60_p3 = por %p59_p2, %p58_p1 }
   0xa   :  { %p61_p4 = pnand %p60_p3, %p54_p0 }
  0x83   :  { %v19_v4 = vpop.permute.xlu0 %18 }
  0x84   :  { %vm20_vm2 = vcmp.ge.s32.totalorder %v13_v5, %v19_v4 }
  0x87   :  { %v24_v6 = vpop.permute.xlu0 %23 }
  0x88   :  { %vm25_vm3 = vcmp.lt.s32.totalorder %v13_v5, %v24_v6 }
  0x89   :  { %vm26_vm5 = vmand %vm20_vm2, %vm25_vm3 }
  0x8a   :  { %vm27_vm6 = vmpackc.low %vm26_vm5, %vm26_vm5 }
  0x8b   :  { %vm28_vm7 = vmpackc.even %vm27_vm6, %vm27_vm6 }
  0x8c   :  { %v29_v8 = vsel %vm28_vm7, 16843009, %v77_v1 }
  0x8d   :  { %v34_v9 = vsel %vm32_vm4, %v29_v8, %v33_v7 }
  0x8e   :  { %35 = vst [vmem:[#allocation2] sm:$0x1] %v34_v9 }
  0x8f   :  { %64 = shalt.err (!%p61_p4)
}
  0x90   :  { %s65_s13 = scalar_lea.hbm %s105_s1, 16 }
  0x91   :  { %p66_p5 = scmp.ne.s32.totalorder %s105_s1, %s65_s13  ;;  %p69_p6 = scmp.lt.u32.totalorder %s65_s13, %s105_s1 }
  0x93   :  { %p71_p7 = pnand %p69_p6, %p66_p5 }
  0x95   :  { %74 = shalt.err (!%p71_p7)
}
  0x96   :  { %45 = dma.vmem_to_hbm [thread:$0]  %s43_s9, 16, %s105_s1, [#allocation3]  }
  0x97   :  { %75 = dma.done.wait [#allocation3], 16  }
  0x98   :  { %76 = vsyncadd [#allocation3], 4294967280 }
  0x99   :  { %49 = vsyncpa [#allocation3], 1 }

</bundles_post_ra>
